<compile_context>
chip_gen: v7x
topology: tpu7x:2x2x1
jax: 0.10.0
libtpu: 0.0.40
codegen_flags: <defaults>
</compile_context>

<pallas_src>
import functools

import jax
import jax.numpy as jnp
from jax import lax
from jax.experimental import pallas as pl
from jax.experimental.pallas import tpu as pltpu


def _mlp_kernel(x_ref, w1_ref, b1_ref, w2_ref, b2_ref, o_ref, *, act_dtype):
    # fc1: (tm, C)bf16 @ (C, H)bf16 -> f32 accumulate, bias added in f32.
    x = x_ref[...].astype(jnp.bfloat16)
    h = jnp.dot(x, w1_ref[...], preferred_element_type=jnp.float32)
    h = (h + b1_ref[...]).astype(act_dtype)
    # tanh-approx GELU: transcendental goes through the otherwise-idle EUP
    # slot; act_dtype=bf16 on v6e/v7x halves VALU/EUP element count and the
    # (tm, H) intermediate footprint.
    half = jnp.asarray(0.5, act_dtype)
    one = jnp.asarray(1.0, act_dtype)
    c = jnp.asarray(0.7978845608028654, act_dtype)   # sqrt(2/pi)
    k = jnp.asarray(0.044715, act_dtype)
    h = half * h * (one + jnp.tanh(c * (h + k * h * h * h)))
    # dropout p=0.0 -> identity.  TODO(synk): add PRNG dropout mask if drop>0.
    # fc2: bf16 MXU inputs, f32 accumulate, f32 bias, cast to output dtype.
    o = jnp.dot(h.astype(jnp.bfloat16), w2_ref[...],
                preferred_element_type=jnp.float32)
    o = o + b2_ref[...]
    o_ref[...] = o.astype(o_ref.dtype)


def _tpu_config():
    """Return (row_tile, use_bf16_activation_math, vmem_limit_bytes)."""
    try:
        kind = jax.devices()[0].device_kind.lower()
    except Exception:
        kind = ""
    pre_v6 = any(v in kind for v in ("v2", "v3", "v4", "v5"))
    try:
        vmem_cap = int(pltpu.get_tpu_info().vmem_capacity_bytes)
    except Exception:
        vmem_cap = (64 << 20) if "v7" in kind else (128 << 20)
    if vmem_cap <= (64 << 20):      # v7x: never request the full physical VMEM
        vmem_limit = 52 << 20
    else:                           # v5e / v6e: 128 MiB physical, go larger
        vmem_limit = 96 << 20
    tm = 256 if pre_v6 else 512
    bf16_act = not pre_v6           # bf16 VALU/EUP only on v6e/v7x
    return tm, bf16_act, vmem_limit


def mlp_pallas(x, w1, b1, w2, b2, *, tm=None, act_dtype=None, out_dtype=None):
    """x: (B, N, C); w1: (C, H); b1: (H,); w2: (H, O); b2: (O,)."""
    B, N, C = x.shape
    H = w1.shape[1]
    O = w2.shape[1]
    M = B * N

    cfg_tm, cfg_bf16, vmem_limit = _tpu_config()
    if tm is None:
        tm = cfg_tm
    if act_dtype is None:
        act_dtype = jnp.bfloat16 if cfg_bf16 else jnp.float32
    if out_dtype is None:
        out_dtype = x.dtype   # pass jnp.bfloat16 here if the consumer accepts it

    # Clamp the row tile to the (8-aligned) token count; Pallas masks the
    # ragged last tile, so M is never padded in HBM.
    tm = max(8, min(int(tm), ((M + 7) // 8) * 8))
    grid_m = pl.cdiv(M, tm)

    lane = 128
    O_pad = pl.cdiv(O, lane) * lane          # lane-dense unmasked output stores

    x2 = x.reshape(M, C)                     # contiguous reshape: free, no cast
    w1b = w1.astype(jnp.bfloat16)
    w2b = w2.astype(jnp.bfloat16)
    b1_2 = b1.astype(jnp.float32).reshape(1, H)
    b2p = b2.astype(jnp.float32)
    if O_pad != O:                           # only in the small-O regime
        w2b = jnp.pad(w2b, ((0, 0), (0, O_pad - O)))
        b2p = jnp.pad(b2p, (0, O_pad - O))
    b2_2 = b2p.reshape(1, O_pad)

    m_work = grid_m * tm
    flops = 2 * m_work * (C * H + H * O_pad)
    bytes_accessed = (
        M * C * x.dtype.itemsize             # x in its original dtype
        + C * H * 2 + H * O_pad * 2          # bf16 weights
        + (H + O_pad) * 4                    # f32 biases
        + M * O_pad * jnp.dtype(out_dtype).itemsize)
    cost = pl.CostEstimate(flops=flops, transcendentals=m_work * H,
                           bytes_accessed=bytes_accessed)

    kernel = functools.partial(_mlp_kernel, act_dtype=act_dtype)

    def run(single_buffer_weights):
        def inv(shape):
            idx = lambda i: (0,) * len(shape)
            if single_buffer_weights:
                return pl.BlockSpec(shape, idx, pipeline_mode=pl.Buffered(1))
            return pl.BlockSpec(shape, idx)

        return pl.pallas_call(
            kernel,
            out_shape=jax.ShapeDtypeStruct((M, O_pad), out_dtype),
            grid_spec=pltpu.PrefetchScalarGridSpec(
                num_scalar_prefetch=0,
                grid=(grid_m,),
                in_specs=[
                    pl.BlockSpec((tm, C), lambda i: (i, 0)),  # x row tile
                    inv((C, H)),                              # fc1 weight (resident)
                    inv((1, H)),                              # fc1 bias
                    inv((H, O_pad)),                          # fc2 weight (resident)
                    inv((1, O_pad)),                          # fc2 bias
                ],
                out_specs=pl.BlockSpec((tm, O_pad), lambda i: (i, 0)),
            ),
            compiler_params=pltpu.CompilerParams(
                dimension_semantics=("parallel",),
                vmem_limit_bytes=int(vmem_limit)),
            cost_estimate=cost,
        )(x2, w1b, b1_2, w2b, b2_2)

    try:
        out2 = run(True)          # single-buffered grid-invariant weights
    except Exception:
        out2 = run(False)         # fallback: default double-buffered specs

    if O_pad != O:
        out2 = out2[:, :O]
    return out2.reshape(B, N, O)


def mlp_reference(x, w1, b1, w2, b2):
    # Exact-erf GELU, full f32 — matches torch.nn.GELU default.
    h = jnp.einsum("bnc,ch->bnh", x, w1) + b1
    h = 0.5 * h * (1.0 + lax.erf(h / jnp.sqrt(2.0)))
    return jnp.einsum("bnh,ho->bno", h, w2) + b2


if __name__ == "__main__":
    key = jax.random.PRNGKey(0)
    B, N = 2, 64
    in_features = 32
    hidden_features = 128
    out_features = in_features  # module default: out_features = in_features

    kx, kw1, kb1, kw2, kb2 = jax.random.split(key, 5)
    x = jax.random.normal(kx, (B, N, in_features), dtype=jnp.float32)
    # deterministic parameter init (analogous to nn.Linear kaiming-uniform)
    lim1 = 1.0 / jnp.sqrt(in_features)
    lim2 = 1.0 / jnp.sqrt(hidden_features)
    w1 = jax.random.uniform(kw1, (in_features, hidden_features),
                            minval=-lim1, maxval=lim1, dtype=jnp.float32)
    b1 = jax.random.uniform(kb1, (hidden_features,),
                            minval=-lim1, maxval=lim1, dtype=jnp.float32)
    w2 = jax.random.uniform(kw2, (hidden_features, out_features),
                            minval=-lim2, maxval=lim2, dtype=jnp.float32)
    b2 = jax.random.uniform(kb2, (out_features,),
                            minval=-lim2, maxval=lim2, dtype=jnp.float32)

    y = mlp_pallas(x, w1, b1, w2, b2)
    y = jax.block_until_ready(y)

    y_ref = mlp_reference(x, w1, b1, w2, b2)
    # bf16 MXU inputs (+ bf16 GELU on v6e/v7x) + tanh-approx GELU
    # -> relaxed tolerance vs f32/erf reference.
    assert y.shape == y_ref.shape, "shape mismatch vs reference"
    assert jnp.allclose(y, y_ref, atol=3e-2, rtol=3e-2), "mismatch vs reference"

    print("KERNEL_OK")
</pallas_src>

<mosaic_0001>
module attributes {stable_mosaic.version = 11 : i64} {
  func.func @_mlp_kernel(%arg0: i32, %arg1: memref<128x32xf32, #tpu.memory_space<vmem>>, %arg2: memref<32x128xbf16, #tpu.memory_space<vmem>>, %arg3: memref<1x128xf32, #tpu.memory_space<vmem>>, %arg4: memref<128x128xbf16, #tpu.memory_space<vmem>>, %arg5: memref<1x128xf32, #tpu.memory_space<vmem>>, %arg6: memref<128x128xf32, #tpu.memory_space<vmem>>) attributes {dimension_semantics = [#tpu.dimension_semantics<parallel>], iteration_bounds = array<i64: 1>, scalar_prefetch = 0 : i64, scratch_operands = 0 : i64, tpu.core_type = #tpu.core_type<tc>, window_params = [{transform_indices = @transform_0, window_bounds = array<i64: 128, 32>}, {pipeline_mode = #tpu.pipeline_mode<synchronous>, transform_indices = @transform_1, window_bounds = array<i64: 32, 128>}, {pipeline_mode = #tpu.pipeline_mode<synchronous>, transform_indices = @transform_2, window_bounds = array<i64: 1, 128>}, {pipeline_mode = #tpu.pipeline_mode<synchronous>, transform_indices = @transform_3, window_bounds = array<i64: 128, 128>}, {pipeline_mode = #tpu.pipeline_mode<synchronous>, transform_indices = @transform_4, window_bounds = array<i64: 1, 128>}, {transform_indices = @transform_5, window_bounds = array<i64: 128, 128>}]} {
    %c0 = arith.constant 0 : index
    %c0_0 = arith.constant 0 : index
    %0 = vector.load %arg1[%c0, %c0_0] : memref<128x32xf32, #tpu.memory_space<vmem>>, vector<128x32xf32>
    %1 = arith.truncf %0 : vector<128x32xf32> to vector<128x32xbf16>
    %c0_1 = arith.constant 0 : index
    %c0_2 = arith.constant 0 : index
    %2 = vector.load %arg2[%c0_1, %c0_2] : memref<32x128xbf16, #tpu.memory_space<vmem>>, vector<32x128xbf16>
    %cst = arith.constant dense<0.000000e+00> : vector<128x128xf32>
    %3 = tpu.matmul %1, %2, %cst {dimension_numbers = #tpu.dot_dimension_numbers<[1], [0], [0], [1], [0, 0, 1, 1], [], []>} : vector<128x32xbf16>, vector<32x128xbf16>, vector<128x128xf32> -> vector<128x128xf32>
    %c0_3 = arith.constant 0 : index
    %c0_4 = arith.constant 0 : index
    %4 = vector.load %arg3[%c0_3, %c0_4] : memref<1x128xf32, #tpu.memory_space<vmem>>, vector<1x128xf32>
    %5 = vector.broadcast %4 : vector<1x128xf32> to vector<128x128xf32>
    %6 = arith.addf %3, %5 : vector<128x128xf32>
    %7 = arith.truncf %6 : vector<128x128xf32> to vector<128x128xbf16>
    %cst_5 = arith.constant 5.000000e-01 : bf16
    %8 = vector.broadcast %cst_5 : bf16 to vector<128x128xbf16>
    %9 = arith.mulf %8, %7 : vector<128x128xbf16>
    %cst_6 = arith.constant 4.467770e-02 : bf16
    %10 = vector.broadcast %cst_6 : bf16 to vector<128x128xbf16>
    %11 = arith.mulf %10, %7 : vector<128x128xbf16>
    %12 = arith.mulf %11, %7 : vector<128x128xbf16>
    %13 = arith.mulf %12, %7 : vector<128x128xbf16>
    %14 = arith.addf %7, %13 : vector<128x128xbf16>
    %cst_7 = arith.constant 7.968750e-01 : bf16
    %15 = vector.broadcast %cst_7 : bf16 to vector<128x128xbf16>
    %16 = arith.mulf %15, %14 : vector<128x128xbf16>
    %17 = math.tanh %16 : vector<128x128xbf16>
    %cst_8 = arith.constant 1.000000e+00 : bf16
    %18 = vector.broadcast %cst_8 : bf16 to vector<128x128xbf16>
    %19 = arith.addf %18, %17 : vector<128x128xbf16>
    %20 = arith.mulf %9, %19 : vector<128x128xbf16>
    %c0_9 = arith.constant 0 : index
    %c0_10 = arith.constant 0 : index
    %21 = vector.load %arg4[%c0_9, %c0_10] : memref<128x128xbf16, #tpu.memory_space<vmem>>, vector<128x128xbf16>
    %cst_11 = arith.constant dense<0.000000e+00> : vector<128x128xf32>
    %22 = tpu.matmul %20, %21, %cst_11 {dimension_numbers = #tpu.dot_dimension_numbers<[1], [0], [0], [1], [0, 0, 1, 1], [], []>} : vector<128x128xbf16>, vector<128x128xbf16>, vector<128x128xf32> -> vector<128x128xf32>
    %c0_12 = arith.constant 0 : index
    %c0_13 = arith.constant 0 : index
    %23 = vector.load %arg5[%c0_12, %c0_13] : memref<1x128xf32, #tpu.memory_space<vmem>>, vector<1x128xf32>
    %24 = vector.broadcast %23 : vector<1x128xf32> to vector<128x128xf32>
    %25 = arith.addf %22, %24 : vector<128x128xf32>
    %c0_14 = arith.constant 0 : index
    %c0_15 = arith.constant 0 : index
    %26 = vector.load %arg6[%c0_14, %c0_15] : memref<128x128xf32, #tpu.memory_space<vmem>>, vector<128x128xf32>
    tpu.vector_store %arg6[%c0_14, %c0_15], %25 {strides = array<i32>} : memref<128x128xf32, #tpu.memory_space<vmem>>, vector<128x128xf32>,
    return
  }
  func.func @transform_0(%arg0: i32) -> (i32, i32) {
    %c0_i32 = arith.constant 0 : i32
    %c0_i32_0 = arith.constant 0 : i32
    return %arg0, %c0_i32 : i32, i32
  }
  func.func @transform_1(%arg0: i32) -> (i32, i32) {
    %c0_i32 = arith.constant 0 : i32
    %c0_i32_0 = arith.constant 0 : i32
    %c0_i32_1 = arith.constant 0 : i32
    return %c0_i32, %c0_i32_0 : i32, i32
  }
  func.func @transform_2(%arg0: i32) -> (i32, i32) {
    %c0_i32 = arith.constant 0 : i32
    %c0_i32_0 = arith.constant 0 : i32
    %c0_i32_1 = arith.constant 0 : i32
    return %c0_i32, %c0_i32_0 : i32, i32
  }
  func.func @transform_3(%arg0: i32) -> (i32, i32) {
    %c0_i32 = arith.constant 0 : i32
    %c0_i32_0 = arith.constant 0 : i32
    %c0_i32_1 = arith.constant 0 : i32
    return %c0_i32, %c0_i32_0 : i32, i32
  }
  func.func @transform_4(%arg0: i32) -> (i32, i32) {
    %c0_i32 = arith.constant 0 : i32
    %c0_i32_0 = arith.constant 0 : i32
    %c0_i32_1 = arith.constant 0 : i32
    return %c0_i32, %c0_i32_0 : i32, i32
  }
  func.func @transform_5(%arg0: i32) -> (i32, i32) {
    %c0_i32 = arith.constant 0 : i32
    %c0_i32_0 = arith.constant 0 : i32
    return %arg0, %c0_i32 : i32, i32
  }
}

module attributes {stable_mosaic.version = 11 : i64} {
  func.func @_mlp_kernel(%arg0: i32, %arg1: memref<128x32xf32, #tpu.memory_space<vmem>>, %arg2: memref<32x128xbf16, #tpu.memory_space<vmem>>, %arg3: memref<1x128xf32, #tpu.memory_space<vmem>>, %arg4: memref<128x128xbf16, #tpu.memory_space<vmem>>, %arg5: memref<1x128xf32, #tpu.memory_space<vmem>>, %arg6: memref<128x128xf32, #tpu.memory_space<vmem>>) attributes {dimension_semantics = [#tpu.dimension_semantics<parallel>], iteration_bounds = array<i64: 1>, scalar_prefetch = 0 : i64, scratch_operands = 0 : i64, tpu.core_type = #tpu.core_type<tc>, window_params = [{transform_indices = @transform_0, window_bounds = array<i64: 128, 32>}, {pipeline_mode = #tpu.pipeline_mode<synchronous>, transform_indices = @transform_1, window_bounds = array<i64: 32, 128>}, {pipeline_mode = #tpu.pipeline_mode<synchronous>, transform_indices = @transform_2, window_bounds = array<i64: 1, 128>}, {pipeline_mode = #tpu.pipeline_mode<synchronous>, transform_indices = @transform_3, window_bounds = array<i64: 128, 128>}, {pipeline_mode = #tpu.pipeline_mode<synchronous>, transform_indices = @transform_4, window_bounds = array<i64: 1, 128>}, {transform_indices = @transform_5, window_bounds = array<i64: 128, 128>}]} {
    %c0 = arith.constant 0 : index
    %c0_0 = arith.constant 0 : index
    %0 = vector.load %arg1[%c0, %c0_0] : memref<128x32xf32, #tpu.memory_space<vmem>>, vector<128x32xf32>
    %1 = arith.truncf %0 : vector<128x32xf32> to vector<128x32xbf16>
    %c0_1 = arith.constant 0 : index
    %c0_2 = arith.constant 0 : index
    %2 = vector.load %arg2[%c0_1, %c0_2] : memref<32x128xbf16, #tpu.memory_space<vmem>>, vector<32x128xbf16>
    %cst = arith.constant dense<0.000000e+00> : vector<128x128xf32>
    %3 = tpu.matmul %1, %2, %cst {dimension_numbers = #tpu.dot_dimension_numbers<[1], [0], [0], [1], [0, 0, 1, 1], [], []>} : vector<128x32xbf16>, vector<32x128xbf16>, vector<128x128xf32> -> vector<128x128xf32>
    %c0_3 = arith.constant 0 : index
    %c0_4 = arith.constant 0 : index
    %4 = vector.load %arg3[%c0_3, %c0_4] : memref<1x128xf32, #tpu.memory_space<vmem>>, vector<1x128xf32>
    %5 = vector.broadcast %4 : vector<1x128xf32> to vector<128x128xf32>
    %6 = arith.addf %3, %5 : vector<128x128xf32>
    %7 = arith.truncf %6 : vector<128x128xf32> to vector<128x128xbf16>
    %cst_5 = arith.constant 5.000000e-01 : bf16
    %8 = vector.broadcast %cst_5 : bf16 to vector<128x128xbf16>
    %9 = arith.mulf %8, %7 : vector<128x128xbf16>
    %cst_6 = arith.constant 4.467770e-02 : bf16
    %10 = vector.broadcast %cst_6 : bf16 to vector<128x128xbf16>
    %11 = arith.mulf %10, %7 : vector<128x128xbf16>
    %12 = arith.mulf %11, %7 : vector<128x128xbf16>
    %13 = arith.mulf %12, %7 : vector<128x128xbf16>
    %14 = arith.addf %7, %13 : vector<128x128xbf16>
    %cst_7 = arith.constant 7.968750e-01 : bf16
    %15 = vector.broadcast %cst_7 : bf16 to vector<128x128xbf16>
    %16 = arith.mulf %15, %14 : vector<128x128xbf16>
    %17 = math.tanh %16 : vector<128x128xbf16>
    %cst_8 = arith.constant 1.000000e+00 : bf16
    %18 = vector.broadcast %cst_8 : bf16 to vector<128x128xbf16>
    %19 = arith.addf %18, %17 : vector<128x128xbf16>
    %20 = arith.mulf %9, %19 : vector<128x128xbf16>
    %c0_9 = arith.constant 0 : index
    %c0_10 = arith.constant 0 : index
    %21 = vector.load %arg4[%c0_9, %c0_10] : memref<128x128xbf16, #tpu.memory_space<vmem>>, vector<128x128xbf16>
    %cst_11 = arith.constant dense<0.000000e+00> : vector<128x128xf32>
    %22 = tpu.matmul %20, %21, %cst_11 {dimension_numbers = #tpu.dot_dimension_numbers<[1], [0], [0], [1], [0, 0, 1, 1], [], []>} : vector<128x128xbf16>, vector<128x128xbf16>, vector<128x128xf32> -> vector<128x128xf32>
    %c0_12 = arith.constant 0 : index
    %c0_13 = arith.constant 0 : index
    %23 = vector.load %arg5[%c0_12, %c0_13] : memref<1x128xf32, #tpu.memory_space<vmem>>, vector<1x128xf32>
    %24 = vector.broadcast %23 : vector<1x128xf32> to vector<128x128xf32>
    %25 = arith.addf %22, %24 : vector<128x128xf32>
    %c0_14 = arith.constant 0 : index
    %c0_15 = arith.constant 0 : index
    %26 = vector.load %arg6[%c0_14, %c0_15] : memref<128x128xf32, #tpu.memory_space<vmem>>, vector<128x128xf32>
    tpu.vector_store %arg6[%c0_14, %c0_15], %25 {strides = array<i32>} : memref<128x128xf32, #tpu.memory_space<vmem>>, vector<128x128xf32>,
    return
  }
  func.func @transform_0(%arg0: i32) -> (i32, i32) {
    %c0_i32 = arith.constant 0 : i32
    %c0_i32_0 = arith.constant 0 : i32
    return %arg0, %c0_i32 : i32, i32
  }
  func.func @transform_1(%arg0: i32) -> (i32, i32) {
    %c0_i32 = arith.constant 0 : i32
    %c0_i32_0 = arith.constant 0 : i32
    %c0_i32_1 = arith.constant 0 : i32
    return %c0_i32, %c0_i32_0 : i32, i32
  }
  func.func @transform_2(%arg0: i32) -> (i32, i32) {
    %c0_i32 = arith.constant 0 : i32
    %c0_i32_0 = arith.constant 0 : i32
    %c0_i32_1 = arith.constant 0 : i32
    return %c0_i32, %c0_i32_0 : i32, i32
  }
  func.func @transform_3(%arg0: i32) -> (i32, i32) {
    %c0_i32 = arith.constant 0 : i32
    %c0_i32_0 = arith.constant 0 : i32
    %c0_i32_1 = arith.constant 0 : i32
    return %c0_i32, %c0_i32_0 : i32, i32
  }
  func.func @transform_4(%arg0: i32) -> (i32, i32) {
    %c0_i32 = arith.constant 0 : i32
    %c0_i32_0 = arith.constant 0 : i32
    %c0_i32_1 = arith.constant 0 : i32
    return %c0_i32, %c0_i32_0 : i32, i32
  }
  func.func @transform_5(%arg0: i32) -> (i32, i32) {
    %c0_i32 = arith.constant 0 : i32
    %c0_i32_0 = arith.constant 0 : i32
    return %arg0, %c0_i32 : i32, i32
  }
}

</mosaic_0001>

<bundles_post_ra>
// kernel: tpu_custom_call.1
= control target key start
LH: loop header
LB: loop body
LE: loop exit
PB: predicated region body
PF: predicated region fallthrough
CT: control target
= control target key end

     0   :  { %10 = vsyncpa [#allocation3], 0  ;;  %s1018_s0 = inlined_call_operand.hbm [shape: f32[128,32], index: 0, kind: input, shape index: {}]   ;;  %s1019_s1 = inlined_call_operand.hbm [shape: bf16[32,128], index: 1, kind: input, shape index: {}]   ;;  %s1020_s2 = inlined_call_operand.hbm [shape: f32[1,128], index: 2, kind: input, shape index: {}]   ;;  %s1021_s3 = inlined_call_operand.hbm [shape: bf16[128,128], index: 3, kind: input, shape index: {}]   ;;  %s1022_s4 = inlined_call_operand.hbm [shape: f32[1,128], index: 4, kind: input, shape index: {}]   ;;  %s1023_s5 = inlined_call_operand.hbm [shape: f32[128,128], index: 5, kind: output, shape index: {}]  }
   0x1   :  { %11 = vsyncpa [#allocation6], 0 }
   0x2   :  { %12 = vsyncpa [#allocation9], 0 }
   0x3   :  { %13 = vsyncpa [#allocation4], 0  ;;  %s832_s18 = smov [#allocation5]   ;;  %s692_s22 = scalar_lea.hbm %s1019_s1, 256 }
   0x4   :  { %s31_s19 = sshll.u32 %s832_s18, 4  ;;  %p693_p0 = scmp.ne.s32.totalorder %s1019_s1, %s692_s22  ;;  %s32_s19 = int_to_ptr.vmem [resolvable:$true] %s31_s19 }
   0x5   :  { %p696_p1 = scmp.lt.u32.totalorder %s692_s22, %s1019_s1 }
   0x7   :  { %p698_p2 = pnand %p696_p1, %p693_p0 }
   0x9   :  { %701 = shalt.err (!%p698_p2)
}
   0xa   :  { %s702_s27 = scalar_lea.vmem %s32_s19, 256  ;;  %p707_p4 = scmp.lt.s32.totalorder %s32_s19, %s32_s19 }
   0xb   :  { %p703_p3 = scmp.ne.s32.totalorder %s32_s19, %s702_s27  ;;  %p708_p5 = scmp.lt.s32.totalorder %s702_s27, %s702_s27 }
   0xd   :  { %p709_p6 = por %p708_p5, %p707_p4 }
   0xf   :  { %p710_p7 = pnand %p709_p6, %p703_p3 }
  0x11   :  { %713 = shalt.err (!%p710_p7)
}
  0x12   :  { %s833_s28 = smov 64   ;;  %s834_s29 = smov 4  }
  0x13   :  { %37 = dma.hbm_to_vmem [thread:$0]  %s1019_s1, 256, %s32_s19, [#allocation6], %s833_s28, %s833_s28, %s834_s29  }
  0x14   :  { %s835_s7 = smov [#allocation8]   ;;  %s836_s9 = smov [#allocation2]  }
  0x15   :  { %s53_s8 = sshll.u32 %s835_s7, 4  ;;  %s19_s10 = sshll.u32 %s836_s9, 4  ;;  %s54_s8 = int_to_ptr.vmem [resolvable:$true] %s53_s8  ;;  %s20_s10 = int_to_ptr.vmem [resolvable:$true] %s19_s10 }
  0x16   :  { %s714_s13 = scalar_lea.hbm %s1021_s3, 1024 }
  0x17   :  { %p715_p8 = scmp.ne.s32.totalorder %s1021_s3, %s714_s13  ;;  %p718_p9 = scmp.lt.u32.totalorder %s714_s13, %s1021_s3 }
  0x19   :  { %p720_p10 = pnand %p718_p9, %p715_p8 }
  0x1b   :  { %723 = shalt.err (!%p720_p10)
}
  0x1c   :  { %s724_s1 = scalar_lea.vmem %s54_s8, 1024  ;;  %p729_p12 = scmp.lt.s32.totalorder %s54_s8, %s54_s8 }
  0x1d   :  { %p725_p11 = scmp.ne.s32.totalorder %s54_s8, %s724_s1  ;;  %p730_p13 = scmp.lt.s32.totalorder %s724_s1, %s724_s1 }
  0x1f   :  { %p731_p0 = por %p730_p13, %p729_p12 }
  0x21   :  { %p732_p1 = pnand %p731_p0, %p725_p11 }
  0x23   :  { %735 = shalt.err (!%p732_p1)
}
  0x24   :  { %59 = dma.hbm_to_vmem [thread:$0]  %s1021_s3, 1024, %s54_s8, [#allocation9], %s833_s28, %s833_s28, %s834_s29  }
  0x25   :  { %s736_s22 = scalar_lea.hbm %s1018_s0, 2048 }
  0x26   :  { %p737_p2 = scmp.ne.s32.totalorder %s1018_s0, %s736_s22  ;;  %p740_p3 = scmp.lt.u32.totalorder %s736_s22, %s1018_s0 }
  0x28   :  { %p742_p4 = pnand %p740_p3, %p737_p2 }
  0x2a   :  { %745 = shalt.err (!%p742_p4)
}
  0x2b   :  { %s746_s27 = scalar_lea.vmem %s20_s10, 2048  ;;  %p751_p6 = scmp.lt.s32.totalorder %s20_s10, %s20_s10 }
  0x2c   :  { %p747_p5 = scmp.ne.s32.totalorder %s20_s10, %s746_s27  ;;  %p752_p7 = scmp.lt.s32.totalorder %s746_s27, %s746_s27 }
  0x2e   :  { %p753_p8 = por %p752_p7, %p751_p6 }
  0x30   :  { %p754_p9 = pnand %p753_p8, %p747_p5 }
  0x32   :  { %757 = shalt.err (!%p754_p9)
}
  0x33   :  { %s837_s3 = smov 128   ;;  %s838_s28 = smov 8  }
  0x34   :  { %25 = dma.hbm_to_vmem [thread:$0]  %s1018_s0, 2048, %s20_s10, [#allocation3], %s837_s3, %s837_s3, %s838_s28  }
  0x35   :  { %s839_s6 = smov [#allocation7]   ;;  %s840_s8 = smov [#allocation10]  }
  0x36   :  { %s44_s7 = sshll.u32 %s839_s6, 4  ;;  %s66_s9 = sshll.u32 %s840_s8, 4  ;;  %s45_s7 = int_to_ptr.vmem [resolvable:$true] %s44_s7  ;;  %s67_s9 = int_to_ptr.vmem [resolvable:$true] %s66_s9 }
  0x37   :  { %s758_s13 = scalar_lea.hbm %s1020_s2, 16 }
  0x38   :  { %p759_p10 = scmp.ne.s32.totalorder %s1020_s2, %s758_s13  ;;  %p762_p11 = scmp.lt.u32.totalorder %s758_s13, %s1020_s2 }
  0x3a   :  { %p764_p12 = pnand %p762_p11, %p759_p10 }
  0x3c   :  { %767 = shalt.err (!%p764_p12)
}
  0x3d   :  { %s768_s0 = scalar_lea.vmem %s45_s7, 16  ;;  %s772_s10 = scalar_lea.vmem %s45_s7, 32 }
  0x3e   :  { %p769_p13 = scmp.ne.s32.totalorder %s45_s7, %s768_s0  ;;  %p773_p0 = scmp.lt.s32.totalorder %s45_s7, %s45_s7 }
  0x3f   :  { %p774_p1 = scmp.lt.s32.totalorder %s772_s10, %s768_s0 }
  0x41   :  { %p775_p2 = por %p774_p1, %p773_p0 }
  0x43   :  { %p776_p3 = pnand %p775_p2, %p769_p13 }
  0x45   :  { %779 = shalt.err (!%p776_p3)
}
  0x46   :  { %47 = dma.hbm_to_vmem [thread:$0]  %s1020_s2, 16, %s45_s7, [#allocation6]  }
  0x47   :  { %s780_s21 = scalar_lea.hbm %s1022_s4, 16 }
  0x48   :  { %p781_p4 = scmp.ne.s32.totalorder %s1022_s4, %s780_s21  ;;  %p784_p5 = scmp.lt.u32.totalorder %s780_s21, %s1022_s4 }
  0x4a   :  { %p786_p6 = pnand %p784_p5, %p781_p4 }
  0x4c   :  { %789 = shalt.err (!%p786_p6)
}
  0x4d   :  { %s790_s26 = scalar_lea.vmem %s67_s9, 16  ;;  %s794_s27 = scalar_lea.vmem %s67_s9, 32 }
  0x4e   :  { %p791_p7 = scmp.ne.s32.totalorder %s67_s9, %s790_s26  ;;  %p795_p8 = scmp.lt.s32.totalorder %s67_s9, %s67_s9 }
  0x4f   :  { %p796_p9 = scmp.lt.s32.totalorder %s794_s27, %s790_s26 }
  0x51   :  { %p797_p10 = por %p796_p9, %p795_p8 }
  0x53   :  { %p798_p11 = pnand %p797_p10, %p791_p7 }
  0x55   :  { %801 = shalt.err (!%p798_p11)
}
  0x56   :  { %69 = dma.hbm_to_vmem [thread:$0]  %s1022_s4, 16, %s67_s9, [#allocation9]  }
  0x57   :  { %824 = dma.done.wait [#allocation3], 2048  }
  0x58   :  { %825 = vsyncadd [#allocation3], 4294965248 }
  0x59   :  { %826 = dma.done.wait [#allocation6], 272  }
  0x5a   :  { %827 = vsyncadd [#allocation6], 4294967024 }
  0x5b   :  { %828 = dma.done.wait [#allocation9], 1040  }
  0x5c   :  { %829 = vsyncadd [#allocation9], 4294966256  ;;  %v666_v0 = vld [vmem:[#allocation5] sm:$0xff]   ;;  %v667_v1 = vld [vmem:[#allocation5 + $0x8] sm:$0xff]   ;;  %vm137_vm0 = vcmask 261120   ;;  %s841_s4 = smov [#allocation11]  }
  0x5d   :  { %588 = vmatprep.subr.bf16.mxu0 %v666_v0  ;;  %v90_v2 = vld [vmem:[#allocation2] sm:$0xff]  ;;  %v91_v3 = vld [vmem:[#allocation2 + $0x8] sm:$0xff]  ;;  %v92_v5 = vld [vmem:[#allocation2 + $0x10] sm:$0xff]  ;;  %s528_s30 = sshll.u32 %s841_s4, 4  ;;  %s529_s30 = int_to_ptr.vmem [resolvable:$true] %s528_s30 }
  0x5e   :  { %589 = vmatpush3.bf16.msra.mxu0 %v666_v0  ;;  %v106_v4 = vpack.c.bf16 %v91_v3, %v90_v2  ;;  %v93_v6 = vld [vmem:[#allocation2 + $0x18] sm:$0xff]  ;;  %v94_v7 = vld [vmem:[#allocation2 + $0x20] sm:$0xff]  ;;  %v95_v8 = vld [vmem:[#allocation2 + $0x28] sm:$0xff]  ;;  %s802_s6 = scalar_lea.vmem %s529_s30, 2048  ;;  %p807_p13 = scmp.lt.s32.totalorder %s529_s30, %s529_s30 }
  0x5f   :  { %590 = vmatprep.subr.bf16.mxu0 %v667_v1  ;;  %v107_v9 = vpack.c.bf16 %v93_v6, %v92_v5  ;;  %v108_v10 = vpack.c.bf16 %v95_v8, %v94_v7  ;;  %v96_v11 = vld [vmem:[#allocation2 + $0x30] sm:$0xff]  ;;  %v97_v12 = vld [vmem:[#allocation2 + $0x38] sm:$0xff]  ;;  %v98_v13 = vld [vmem:[#allocation2 + $0x40] sm:$0xff]  ;;  %p803_p12 = scmp.ne.s32.totalorder %s529_s30, %s802_s6  ;;  %p808_p0 = scmp.lt.s32.totalorder %s802_s6, %s802_s6 }
  0x60   :  { %592 = vmatprep.mubr.msk.bf16.mxu0 %vm137_vm0, %v106_v4  ;;  %v99_v14 = vld [vmem:[#allocation2 + $0x48] sm:$0xff]  ;;  %v109_v15 = vpack.c.bf16 %v97_v12, %v96_v11  ;;  %v100_v17 = vld [vmem:[#allocation2 + $0x50] sm:$0xff]  ;;  %v101_v18 = vld [vmem:[#allocation2 + $0x58] sm:$0xff] }
  0x61   :  { %v110_v16 = vpack.c.bf16 %v99_v14, %v98_v13  ;;  %v102_v19 = vld [vmem:[#allocation2 + $0x60] sm:$0xff]  ;;  %v103_v20 = vld [vmem:[#allocation2 + $0x68] sm:$0xff]  ;;  %v111_v21 = vpack.c.bf16 %v101_v18, %v100_v17  ;;  %v104_v23 = vld [vmem:[#allocation2 + $0x70] sm:$0xff]  ;;  %p809_p1 = por %p808_p0, %p807_p13 }
  0x62   :  { %591 = vmatpush3.bf16.msra.mxu0 %v667_v1  ;;  %v112_v22 = vpack.c.bf16 %v103_v20, %v102_v19  ;;  %v105_v24 = vld [vmem:[#allocation2 + $0x78] sm:$0xff]  ;;  %v670_v28 = vld [vmem:[#allocation8 + $0x10] sm:$0xff]   ;;  %v671_v29 = vld [vmem:[#allocation8 + $0x18] sm:$0xff]  }
  0x63   :  { %v113_v25 = vpack.c.bf16 %v105_v24, %v104_v23  ;;  %v668_v26 = vld [vmem:[#allocation8] sm:$0xff]   ;;  %v669_v27 = vld [vmem:[#allocation8 + $0x8] sm:$0xff]   ;;  %v674_v32 = vld [vmem:[#allocation8 + $0x30] sm:$0xff]   ;;  %p810_p2 = pnand %p809_p1, %p803_p12 }
  0x64   :  { %608 = vmatprep.subr.bf16.mxu0 %v668_v26  ;;  %640 = vmatprep.subr.bf16.mxu1 %v668_v26  ;;  %v672_v30 = vld [vmem:[#allocation8 + $0x20] sm:$0xff]   ;;  %v673_v31 = vld [vmem:[#allocation8 + $0x28] sm:$0xff]   ;;  %v675_v33 = vld [vmem:[#allocation8 + $0x38] sm:$0xff]  }
  0x65   :  { %593 = vmatmul.mubr.msk.bf16.vlgmr.msra.gmra.mrb[0].mxu0 %vm137_vm0, %v107_v9  ;;  %648 = vmatpush3.bf16.msra.mxu1 %v668_v26  ;;  %v943_v35 = vld [vmem:[#allocation7] ss:$0 sm:$0xff] }
  0x66   :  { %596 = vmatprep.mubr.msk.bf16.mxu0 %vm137_vm0, %v108_v10  ;;  %609 = vmatpush3.bf16.msra.mxu0 %v668_v26 }
  0x67   :  { %610 = vmatprep.subr.bf16.mxu0 %v669_v27  ;;  %641 = vmatprep.subr.bf16.mxu1 %v669_v27 }
  0x69   :  { %649 = vmatpush3.bf16.msra.mxu1 %v669_v27 }
  0x6a   :  { %611 = vmatpush3.bf16.msra.mxu0 %v669_v27  ;;  %642 = vmatprep.subr.bf16.mxu1 %v670_v28 }
  0x6b   :  { %612 = vmatprep.subr.bf16.mxu0 %v670_v28 }
  0x6d   :  { %597 = vmatmul.mubr.msk.bf16.gmra.mrb[4].mxu0 %vm137_vm0, %v109_v15  ;;  %650 = vmatpush3.bf16.msra.mxu1 %v670_v28 }
  0x6e   :  { %600 = vmatprep.mubr.msk.bf16.mxu0 %vm137_vm0, %v110_v16  ;;  %613 = vmatpush3.bf16.msra.mxu0 %v670_v28 }
  0x6f   :  { %614 = vmatprep.subr.bf16.mxu0 %v671_v29  ;;  %643 = vmatprep.subr.bf16.mxu1 %v671_v29 }
  0x71   :  { %651 = vmatpush3.bf16.msra.mxu1 %v671_v29 }
  0x72   :  { %615 = vmatpush3.bf16.msra.mxu0 %v671_v29  ;;  %644 = vmatprep.subr.bf16.mxu1 %v672_v30 }
  0x73   :  { %616 = vmatprep.subr.bf16.mxu0 %v672_v30 }
  0x75   :  { %601 = vmatmul.mubr.msk.bf16.gmra.mrb[8].mxu0 %vm137_vm0, %v111_v21  ;;  %652 = vmatpush3.bf16.msra.mxu1 %v672_v30 }
  0x76   :  { %604 = vmatprep.mubr.msk.bf16.mxu0 %vm137_vm0, %v112_v22  ;;  %617 = vmatpush3.bf16.msra.mxu0 %v672_v30 }
  0x77   :  { %618 = vmatprep.subr.bf16.mxu0 %v673_v31  ;;  %645 = vmatprep.subr.bf16.mxu1 %v673_v31 }
  0x79   :  { %653 = vmatpush3.bf16.msra.mxu1 %v673_v31 }
  0x7a   :  { %619 = vmatpush3.bf16.msra.mxu0 %v673_v31  ;;  %646 = vmatprep.subr.bf16.mxu1 %v674_v32 }
  0x7b   :  { %620 = vmatprep.subr.bf16.mxu0 %v674_v32 }
  0x7d   :  { %605 = vmatmul.mubr.msk.bf16.gmra.mrb[12].mxu0 %vm137_vm0, %v113_v25  ;;  %654 = vmatpush3.bf16.msra.mxu1 %v674_v32 }
  0x7e   :  { %621 = vmatpush3.bf16.msra.mxu0 %v674_v32  ;;  %647 = vmatprep.subr.bf16.mxu1 %v675_v33 }
  0x7f   :  { %622 = vmatprep.subr.bf16.mxu0 %v675_v33 }
  0x81   :  { %655 = vmatpush3.bf16.msra.mxu1 %v675_v33 }
  0x82   :  { %623 = vmatpush3.bf16.msra.mxu0 %v675_v33 }
 0x138   :  { %v594_v34 = vpop.f32.mrb[0].mxu0 }
 0x139   :  { %v196_v36 = vpop.f32.mrb[1].mxu0  ;;  %v205_v38 = vadd.f32 %v594_v34, %v943_v35 }
 0x13a   :  { %v595_v37 = vpop.f32.mrb[2].mxu0  ;;  %v197_v41 = vadd.f32 %v943_v35, %v196_v36 }
 0x13b   :  { %v208_v39 = vadd.f32 %v595_v37, %v943_v35  ;;  %v199_v40 = vpop.f32.mrb[3].mxu0 }
 0x13c   :  { %v200_v42 = vadd.f32 %v943_v35, %v199_v40 }
 0x13d   :  { %v949_v43 = vpack.c.bf16 %v208_v39, %v205_v38 }
 0x13e   :  { %v951_v44 = vpack.c.bf16 %v200_v42, %v197_v41 }
 0x13f   :  { %v276_v45 = vmul.bf16 1027030327, %v949_v43 }
 0x140   :  { %v275_v46 = vmul.bf16 1027030327, %v951_v44  ;;  %v598_v47 = vpop.f32.mrb[4].mxu0  ;;  %v267_v42 = vmul.bf16 1056980736, %v951_v44 }
 0x141   :  { %v284_v48 = vmul.bf16 %v276_v45, %v949_v43  ;;  %v212_v49 = vpop.f32.mrb[5].mxu0  ;;  %v221_v53 = vadd.f32 %v598_v47, %v943_v35 }
 0x142   :  { %v599_v50 = vpop.f32.mrb[6].mxu0  ;;  %v283_v51 = vmul.bf16 %v275_v46, %v951_v44  ;;  %v213_v56 = vadd.f32 %v943_v35, %v212_v49 }
 0x143   :  { %v292_v52 = vmul.bf16 %v284_v48, %v949_v43  ;;  %v224_v54 = vadd.f32 %v599_v50, %v943_v35  ;;  %v215_v55 = vpop.f32.mrb[7].mxu0  ;;  %v268_v48 = vmul.bf16 1056980736, %v949_v43 }
 0x144   :  { %v216_v57 = vadd.f32 %v943_v35, %v215_v55  ;;  %v291_v58 = vmul.bf16 %v283_v51, %v951_v44 }
 0x145   :  { %v300_v59 = vadd.bf16 %v292_v52, %v949_v43  ;;  %v964_v60 = vpack.c.bf16 %v224_v54, %v221_v53 }
 0x146   :  { %v966_v61 = vpack.c.bf16 %v216_v57, %v213_v56  ;;  %v299_v62 = vadd.bf16 %v291_v58, %v951_v44 }
 0x147   :  { %v308_v63 = vmul.bf16 1061961548, %v300_v59  ;;  %v278_v0 = vmul.bf16 1027030327, %v964_v60 }
 0x148   :  { %v602_v1 = vpop.f32.mrb[8].mxu0  ;;  %v307_v2 = vmul.bf16 1061961548, %v299_v62  ;;  %v277_v4 = vmul.bf16 1027030327, %v966_v61 }
 0x149   :  { %676 = vtanh.bf16 %v308_v63  ;;  %v228_v3 = vpop.f32.mrb[9].mxu0  ;;  %v286_v5 = vmul.bf16 %v278_v0, %v964_v60  ;;  %v237_v7 = vadd.f32 %v602_v1, %v943_v35  ;;  %v269_v43 = vmul.bf16 1056980736, %v966_v61 }
 0x14a   :  { %v603_v6 = vpop.f32.mrb[10].mxu0  ;;  %678 = vtanh.bf16 %v307_v2  ;;  %v285_v10 = vmul.bf16 %v277_v4, %v966_v61  ;;  %v229_v12 = vadd.f32 %v943_v35, %v228_v3  ;;  %v270_v1 = vmul.bf16 1056980736, %v964_v60 }
 0x14b   :  { %v240_v8 = vadd.f32 %v603_v6, %v943_v35  ;;  %v231_v9 = vpop.f32.mrb[11].mxu0  ;;  %v294_v11 = vmul.bf16 %v286_v5, %v964_v60 }
 0x14c   :  { %v232_v13 = vadd.f32 %v943_v35, %v231_v9  ;;  %v293_v15 = vmul.bf16 %v285_v10, %v966_v61 }
 0x14d   :  { %v978_v14 = vpack.c.bf16 %v240_v8, %v237_v7  ;;  %v302_v16 = vadd.bf16 %v294_v11, %v964_v60 }
 0x14e   :  { %v982_v17 = vpack.c.bf16 %v232_v13, %v229_v12  ;;  %v301_v19 = vadd.bf16 %v293_v15, %v966_v61 }
 0x14f   :  { %v280_v18 = vmul.bf16 1027030327, %v978_v14  ;;  %v310_v20 = vmul.bf16 1061961548, %v302_v16  ;;  %v272_v61 = vmul.bf16 1056980736, %v978_v14 }
 0x150   :  { %v279_v21 = vmul.bf16 1027030327, %v982_v17  ;;  %v606_v22 = vpop.f32.mrb[12].mxu0  ;;  %v309_v24 = vmul.bf16 1061961548, %v301_v19 }
 0x151   :  { %v244_v23 = vpop.f32.mrb[13].mxu0  ;;  %680 = vtanh.bf16 %v310_v20  ;;  %v288_v25 = vmul.bf16 %v280_v18, %v978_v14  ;;  %v253_v28 = vadd.f32 %v606_v22, %v943_v35  ;;  %v271_v7 = vmul.bf16 1056980736, %v982_v17 }
 0x152   :  { %v607_v26 = vpop.f32.mrb[14].mxu0  ;;  %v287_v27 = vmul.bf16 %v279_v21, %v982_v17  ;;  %682 = vtanh.bf16 %v309_v24  ;;  %v245_v33 = vadd.f32 %v943_v35, %v244_v23  ;;  %v553_v21 = vld [vmem:[#allocation10] ss:$0 sm:$0xff] }
 0x153   :  { %v256_v29 = vadd.f32 %v607_v26, %v943_v35  ;;  %v247_v30 = vpop.f32.mrb[15].mxu0  ;;  %v296_v31 = vmul.bf16 %v288_v25, %v978_v14 }
 0x154   :  { %v677_v32 = vpop.eup %676  ;;  %v248_v34 = vadd.f32 %v943_v35, %v247_v30  ;;  %v295_v36 = vmul.bf16 %v287_v27, %v982_v17 }
 0x155   :  { %v679_v37 = vpop.eup %678  ;;  %v266_v38 = vpack.c.bf16 %v256_v29, %v253_v28  ;;  %v324_v39 = vadd.bf16 1065369472, %v677_v32  ;;  %v304_v40 = vadd.bf16 %v296_v31, %v978_v14 }
 0x156   :  { %v265_v41 = vpack.c.bf16 %v248_v34, %v245_v33  ;;  %v323_v45 = vadd.bf16 1065369472, %v679_v37  ;;  %v303_v46 = vadd.bf16 %v295_v36, %v982_v17 }
 0x157   :  { %v282_v47 = vmul.bf16 1027030327, %v266_v38  ;;  %v312_v49 = vmul.bf16 1061961548, %v304_v40  ;;  %v332_v52 = vmul.bf16 %v324_v39, %v268_v48  ;;  %v274_v19 = vmul.bf16 1056980736, %v266_v38 }
 0x158   :  { %v281_v50 = vmul.bf16 1027030327, %v265_v41  ;;  %v331_v51 = vmul.bf16 %v323_v45, %v267_v42  ;;  %v311_v35 = vmul.bf16 1061961548, %v303_v46  ;;  %v273_v13 = vmul.bf16 1056980736, %v265_v41 }
 0x159   :  { %684 = vtanh.bf16 %v312_v49  ;;  %v290_v53 = vmul.bf16 %v282_v47, %v266_v38 }
 0x15a   :  { %624 = vmatprep.mubr.bf16.mxu0 %v331_v51  ;;  %686 = vtanh.bf16 %v311_v35  ;;  %v289_v54 = vmul.bf16 %v281_v50, %v265_v41 }
 0x15b   :  { %625 = vmatmul.mubr.bf16.vlgmr.msra.gmra.mrb[16].mxu0 %v332_v52  ;;  %v298_v55 = vmul.bf16 %v290_v53, %v266_v38 }
 0x15c   :  { %v681_v56 = vpop.eup %680  ;;  %v297_v44 = vmul.bf16 %v289_v54, %v265_v41 }
 0x15d   :  { %v306_v57 = vadd.bf16 %v298_v55, %v266_v38  ;;  %v683_v58 = vpop.eup %682  ;;  %v326_v59 = vadd.bf16 1065369472, %v681_v56 }
 0x15e   :  { %v305_v62 = vadd.bf16 %v297_v44, %v265_v41  ;;  %v325_v63 = vadd.bf16 1065369472, %v683_v58 }
 0x15f   :  { %v314_v0 = vmul.bf16 1061961548, %v306_v57  ;;  %v334_v4 = vmul.bf16 %v326_v59, %v270_v1 }
 0x160   :  { %v313_v2 = vmul.bf16 1061961548, %v305_v62  ;;  %v333_v3 = vmul.bf16 %v325_v63, %v269_v43 }
 0x161   :  { %688 = vtanh.bf16 %v314_v0 }
 0x162   :  { %690 = vtanh.bf16 %v313_v2  ;;  %628 = vmatprep.mubr.bf16.mxu1 %v333_v3 }
 0x163   :  { %629 = vmatmul.mubr.bf16.vlgmr.msra.gmra.mrb[0].mxu1 %v334_v4 }
 0x164   :  { %v685_v5 = vpop.eup %684 }
 0x165   :  { %v687_v6 = vpop.eup %686  ;;  %v328_v9 = vadd.bf16 1065369472, %v685_v5 }
 0x166   :  { %v327_v8 = vadd.bf16 1065369472, %v687_v6 }
 0x167   :  { %v336_v11 = vmul.bf16 %v328_v9, %v272_v61 }
 0x168   :  { %v335_v10 = vmul.bf16 %v327_v8, %v271_v7 }
 0x16a   :  { %632 = vmatprep.mubr.bf16.mxu1 %v335_v10 }
 0x16b   :  { %633 = vmatmul.mubr.bf16.gmra.mrb[4].mxu1 %v336_v11 }
 0x16c   :  { %v689_v12 = vpop.eup %688 }
 0x16d   :  { %v691_v60 = vpop.eup %690  ;;  %v330_v16 = vadd.bf16 1065369472, %v689_v12 }
 0x16e   :  { %v329_v15 = vadd.bf16 1065369472, %v691_v60 }
 0x16f   :  { %v338_v20 = vmul.bf16 %v330_v16, %v274_v19 }
 0x170   :  { %v337_v18 = vmul.bf16 %v329_v15, %v273_v13 }
 0x172   :  { %636 = vmatprep.mubr.bf16.mxu1 %v337_v18 }
 0x173   :  { %637 = vmatmul.mubr.bf16.gmra.mrb[8].mxu1 %v338_v20 }
 0x22e   :  { %v626_v17 = vpop.f32.mrb[16].mxu0 }
 0x22f   :  { %v453_v22 = vadd.f32 %v626_v17, %v553_v21  ;;  %v444_v23 = vpop.f32.mrb[17].mxu0 }
 0x230   :  { %v445_v24 = vadd.f32 %v553_v21, %v444_v23  ;;  %v627_v25 = vpop.f32.mrb[18].mxu0 }
 0x231   :  { %509 = vst [vmem:[#allocation11 + $0x10] sm:$0xff] %v453_v22  ;;  %v456_v14 = vadd.f32 %v627_v25, %v553_v21  ;;  %v447_v26 = vpop.f32.mrb[19].mxu0 }
 0x232   :  { %507 = vst [vmem:[#allocation11] sm:$0xff] %v445_v24  ;;  %v448_v27 = vadd.f32 %v553_v21, %v447_v26 }
 0x233   :  { %510 = vst [vmem:[#allocation11 + $0x18] sm:$0xff] %v456_v14 }
 0x234   :  { %508 = vst [vmem:[#allocation11 + $0x8] sm:$0xff] %v448_v27 }
 0x236   :  { %v630_v28 = vpop.f32.mrb[0].mxu1 }
 0x237   :  { %v469_v29 = vadd.f32 %v630_v28, %v553_v21  ;;  %v460_v30 = vpop.f32.mrb[1].mxu1 }
 0x238   :  { %v461_v31 = vadd.f32 %v553_v21, %v460_v30  ;;  %v631_v32 = vpop.f32.mrb[2].mxu1 }
 0x239   :  { %513 = vst [vmem:[#allocation11 + $0x30] sm:$0xff] %v469_v29  ;;  %v472_v33 = vadd.f32 %v631_v32, %v553_v21  ;;  %v463_v34 = vpop.f32.mrb[3].mxu1 }
 0x23a   :  { %511 = vst [vmem:[#allocation11 + $0x20] sm:$0xff] %v461_v31  ;;  %v464_v36 = vadd.f32 %v553_v21, %v463_v34 }
 0x23b   :  { %514 = vst [vmem:[#allocation11 + $0x38] sm:$0xff] %v472_v33 }
 0x23c   :  { %512 = vst [vmem:[#allocation11 + $0x28] sm:$0xff] %v464_v36 }
 0x23e   :  { %v634_v37 = vpop.f32.mrb[4].mxu1 }
 0x23f   :  { %v485_v38 = vadd.f32 %v634_v37, %v553_v21  ;;  %v476_v39 = vpop.f32.mrb[5].mxu1 }
 0x240   :  { %v477_v40 = vadd.f32 %v553_v21, %v476_v39  ;;  %v635_v41 = vpop.f32.mrb[6].mxu1 }
 0x241   :  { %517 = vst [vmem:[#allocation11 + $0x50] sm:$0xff] %v485_v38  ;;  %v488_v42 = vadd.f32 %v635_v41, %v553_v21  ;;  %v479_v45 = vpop.f32.mrb[7].mxu1 }
 0x242   :  { %515 = vst [vmem:[#allocation11 + $0x40] sm:$0xff] %v477_v40  ;;  %v480_v46 = vadd.f32 %v553_v21, %v479_v45 }
 0x243   :  { %518 = vst [vmem:[#allocation11 + $0x58] sm:$0xff] %v488_v42 }
 0x244   :  { %516 = vst [vmem:[#allocation11 + $0x48] sm:$0xff] %v480_v46 }
 0x246   :  { %v638_v47 = vpop.f32.mrb[8].mxu1 }
 0x247   :  { %v501_v48 = vadd.f32 %v638_v47, %v553_v21  ;;  %v492_v49 = vpop.f32.mrb[9].mxu1 }
 0x248   :  { %v493_v50 = vadd.f32 %v553_v21, %v492_v49  ;;  %v639_v51 = vpop.f32.mrb[10].mxu1 }
 0x249   :  { %521 = vst [vmem:[#allocation11 + $0x70] sm:$0xff] %v501_v48  ;;  %v504_v35 = vadd.f32 %v639_v51, %v553_v21  ;;  %v495_v52 = vpop.f32.mrb[11].mxu1 }
 0x24a   :  { %519 = vst [vmem:[#allocation11 + $0x60] sm:$0xff] %v493_v50  ;;  %v496_v53 = vadd.f32 %v553_v21, %v495_v52 }
 0x24b   :  { %522 = vst [vmem:[#allocation11 + $0x78] sm:$0xff] %v504_v35 }
 0x24c   :  { %520 = vst [vmem:[#allocation11 + $0x68] sm:$0xff] %v496_v53 }
 0x24d   :  { %813 = shalt.err (!%p810_p2)
}
 0x24e   :  { %s814_s9 = scalar_lea.hbm %s1023_s5, 2048 }
 0x24f   :  { %p815_p3 = scmp.ne.s32.totalorder %s1023_s5, %s814_s9  ;;  %p818_p4 = scmp.lt.u32.totalorder %s814_s9, %s1023_s5 }
 0x251   :  { %p820_p5 = pnand %p818_p4, %p815_p3 }
 0x253   :  { %823 = shalt.err (!%p820_p5)
}
 0x254   :  { %534 = dma.vmem_to_hbm [thread:$0]  %s529_s30, 2048, %s1023_s5, [#allocation4], %s837_s3, %s837_s3, %s838_s28  }
 0x255   :  { %830 = dma.done.wait [#allocation4], 2048  }
 0x256   :  { %831 = vsyncadd [#allocation4], 4294965248 }
 0x257   :  { %538 = vsyncpa [#allocation3], 1 }
 0x258   :  { %539 = vsyncpa [#allocation6], 1 }
 0x259   :  { %540 = vsyncpa [#allocation9], 1 }
 0x25a   :  { %541 = vsyncpa [#allocation4], 1 }

// kernel: tpu_custom_call.1
= control target key start
LH: loop header
LB: loop body
LE: loop exit
PB: predicated region body
PF: predicated region fallthrough
CT: control target
= control target key end

     0   :  { %10 = vsyncpa [#allocation3], 0  ;;  %s1018_s0 = inlined_call_operand.hbm [shape: f32[128,32], index: 0, kind: input, shape index: {}]   ;;  %s1019_s1 = inlined_call_operand.hbm [shape: bf16[32,128], index: 1, kind: input, shape index: {}]   ;;  %s1020_s2 = inlined_call_operand.hbm [shape: f32[1,128], index: 2, kind: input, shape index: {}]   ;;  %s1021_s3 = inlined_call_operand.hbm [shape: bf16[128,128], index: 3, kind: input, shape index: {}]   ;;  %s1022_s4 = inlined_call_operand.hbm [shape: f32[1,128], index: 4, kind: input, shape index: {}]   ;;  %s1023_s5 = inlined_call_operand.hbm [shape: f32[128,128], index: 5, kind: output, shape index: {}]  }
   0x1   :  { %11 = vsyncpa [#allocation6], 0 }
   0x2   :  { %12 = vsyncpa [#allocation9], 0 }
   0x3   :  { %13 = vsyncpa [#allocation4], 0  ;;  %s832_s18 = smov [#allocation5]   ;;  %s692_s22 = scalar_lea.hbm %s1019_s1, 256 }
   0x4   :  { %s31_s19 = sshll.u32 %s832_s18, 4  ;;  %p693_p0 = scmp.ne.s32.totalorder %s1019_s1, %s692_s22  ;;  %s32_s19 = int_to_ptr.vmem [resolvable:$true] %s31_s19 }
   0x5   :  { %p696_p1 = scmp.lt.u32.totalorder %s692_s22, %s1019_s1 }
   0x7   :  { %p698_p2 = pnand %p696_p1, %p693_p0 }
   0x9   :  { %701 = shalt.err (!%p698_p2)
}
   0xa   :  { %s702_s27 = scalar_lea.vmem %s32_s19, 256  ;;  %p707_p4 = scmp.lt.s32.totalorder %s32_s19, %s32_s19 }
   0xb   :  { %p703_p3 = scmp.ne.s32.totalorder %s32_s19, %s702_s27  ;;  %p708_p5 = scmp.lt.s32.totalorder %s702_s27, %s702_s27 }
   0xd   :  { %p709_p6 = por %p708_p5, %p707_p4 }
   0xf   :  { %p710_p7 = pnand %p709_p6, %p703_p3 }
  0x11   :  { %713 = shalt.err (!%p710_p7)
}
  0x12   :  { %s833_s28 = smov 64   ;;  %s834_s29 = smov 4  }
  0x13   :  { %37 = dma.hbm_to_vmem [thread:$0]  %s1019_s1, 256, %s32_s19, [#allocation6], %s833_s28, %s833_s28, %s834_s29  }
  0x14   :  { %s835_s7 = smov [#allocation8]   ;;  %s836_s9 = smov [#allocation2]  }
  0x15   :  { %s53_s8 = sshll.u32 %s835_s7, 4  ;;  %s19_s10 = sshll.u32 %s836_s9, 4  ;;  %s54_s8 = int_to_ptr.vmem [resolvable:$true] %s53_s8  ;;  %s20_s10 = int_to_ptr.vmem [resolvable:$true] %s19_s10 }
  0x16   :  { %s714_s13 = scalar_lea.hbm %s1021_s3, 1024 }
  0x17   :  { %p715_p8 = scmp.ne.s32.totalorder %s1021_s3, %s714_s13  ;;  %p718_p9 = scmp.lt.u32.totalorder %s714_s13, %s1021_s3 }
  0x19   :  { %p720_p10 = pnand %p718_p9, %p715_p8 }
  0x1b   :  { %723 = shalt.err (!%p720_p10)
}
  0x1c   :  { %s724_s1 = scalar_lea.vmem %s54_s8, 1024  ;;  %p729_p12 = scmp.lt.s32.totalorder %s54_s8, %s54_s8 }
  0x1d   :  { %p725_p11 = scmp.ne.s32.totalorder %s54_s8, %s724_s1  ;;  %p730_p13 = scmp.lt.s32.totalorder %s724_s1, %s724_s1 }
  0x1f   :  { %p731_p0 = por %p730_p13, %p729_p12 }
  0x21   :  { %p732_p1 = pnand %p731_p0, %p725_p11 }
  0x23   :  { %735 = shalt.err (!%p732_p1)
}
  0x24   :  { %59 = dma.hbm_to_vmem [thread:$0]  %s1021_s3, 1024, %s54_s8, [#allocation9], %s833_s28, %s833_s28, %s834_s29  }
  0x25   :  { %s736_s22 = scalar_lea.hbm %s1018_s0, 2048 }
  0x26   :  { %p737_p2 = scmp.ne.s32.totalorder %s1018_s0, %s736_s22  ;;  %p740_p3 = scmp.lt.u32.totalorder %s736_s22, %s1018_s0 }
  0x28   :  { %p742_p4 = pnand %p740_p3, %p737_p2 }
  0x2a   :  { %745 = shalt.err (!%p742_p4)
}
  0x2b   :  { %s746_s27 = scalar_lea.vmem %s20_s10, 2048  ;;  %p751_p6 = scmp.lt.s32.totalorder %s20_s10, %s20_s10 }
  0x2c   :  { %p747_p5 = scmp.ne.s32.totalorder %s20_s10, %s746_s27  ;;  %p752_p7 = scmp.lt.s32.totalorder %s746_s27, %s746_s27 }
  0x2e   :  { %p753_p8 = por %p752_p7, %p751_p6 }
  0x30   :  { %p754_p9 = pnand %p753_p8, %p747_p5 }
  0x32   :  { %757 = shalt.err (!%p754_p9)
}
  0x33   :  { %s837_s3 = smov 128   ;;  %s838_s28 = smov 8  }
  0x34   :  { %25 = dma.hbm_to_vmem [thread:$0]  %s1018_s0, 2048, %s20_s10, [#allocation3], %s837_s3, %s837_s3, %s838_s28  }
  0x35   :  { %s839_s6 = smov [#allocation7]   ;;  %s840_s8 = smov [#allocation10]  }
  0x36   :  { %s44_s7 = sshll.u32 %s839_s6, 4  ;;  %s66_s9 = sshll.u32 %s840_s8, 4  ;;  %s45_s7 = int_to_ptr.vmem [resolvable:$true] %s44_s7  ;;  %s67_s9 = int_to_ptr.vmem [resolvable:$true] %s66_s9 }
  0x37   :  { %s758_s13 = scalar_lea.hbm %s1020_s2, 16 }
  0x38   :  { %p759_p10 = scmp.ne.s32.totalorder %s1020_s2, %s758_s13  ;;  %p762_p11 = scmp.lt.u32.totalorder %s758_s13, %s1020_s2 }
  0x3a   :  { %p764_p12 = pnand %p762_p11, %p759_p10 }
  0x3c   :  { %767 = shalt.err (!%p764_p12)
}
  0x3d   :  { %s768_s0 = scalar_lea.vmem %s45_s7, 16  ;;  %s772_s10 = scalar_lea.vmem %s45_s7, 32 }
  0x3e   :  { %p769_p13 = scmp.ne.s32.totalorder %s45_s7, %s768_s0  ;;  %p773_p0 = scmp.lt.s32.totalorder %s45_s7, %s45_s7 }
  0x3f   :  { %p774_p1 = scmp.lt.s32.totalorder %s772_s10, %s768_s0 }
  0x41   :  { %p775_p2 = por %p774_p1, %p773_p0 }
  0x43   :  { %p776_p3 = pnand %p775_p2, %p769_p13 }
  0x45   :  { %779 = shalt.err (!%p776_p3)
}
  0x46   :  { %47 = dma.hbm_to_vmem [thread:$0]  %s1020_s2, 16, %s45_s7, [#allocation6]  }
  0x47   :  { %s780_s21 = scalar_lea.hbm %s1022_s4, 16 }
  0x48   :  { %p781_p4 = scmp.ne.s32.totalorder %s1022_s4, %s780_s21  ;;  %p784_p5 = scmp.lt.u32.totalorder %s780_s21, %s1022_s4 }
  0x4a   :  { %p786_p6 = pnand %p784_p5, %p781_p4 }
  0x4c   :  { %789 = shalt.err (!%p786_p6)
}
  0x4d   :  { %s790_s26 = scalar_lea.vmem %s67_s9, 16  ;;  %s794_s27 = scalar_lea.vmem %s67_s9, 32 }
  0x4e   :  { %p791_p7 = scmp.ne.s32.totalorder %s67_s9, %s790_s26  ;;  %p795_p8 = scmp.lt.s32.totalorder %s67_s9, %s67_s9 }
  0x4f   :  { %p796_p9 = scmp.lt.s32.totalorder %s794_s27, %s790_s26 }
  0x51   :  { %p797_p10 = por %p796_p9, %p795_p8 }
  0x53   :  { %p798_p11 = pnand %p797_p10, %p791_p7 }
  0x55   :  { %801 = shalt.err (!%p798_p11)
}
  0x56   :  { %69 = dma.hbm_to_vmem [thread:$0]  %s1022_s4, 16, %s67_s9, [#allocation9]  }
  0x57   :  { %824 = dma.done.wait [#allocation3], 2048  }
  0x58   :  { %825 = vsyncadd [#allocation3], 4294965248 }
  0x59   :  { %826 = dma.done.wait [#allocation6], 272  }
  0x5a   :  { %827 = vsyncadd [#allocation6], 4294967024 }
  0x5b   :  { %828 = dma.done.wait [#allocation9], 1040  }
  0x5c   :  { %829 = vsyncadd [#allocation9], 4294966256  ;;  %v666_v0 = vld [vmem:[#allocation5] sm:$0xff]   ;;  %v667_v1 = vld [vmem:[#allocation5 + $0x8] sm:$0xff]   ;;  %vm137_vm0 = vcmask 261120   ;;  %s841_s4 = smov [#allocation11]  }
  0x5d   :  { %588 = vmatprep.subr.bf16.mxu0 %v666_v0  ;;  %v90_v2 = vld [vmem:[#allocation2] sm:$0xff]  ;;  %v91_v3 = vld [vmem:[#allocation2 + $0x8] sm:$0xff]  ;;  %v92_v5 = vld [vmem:[#allocation2 + $0x10] sm:$0xff]  ;;  %s528_s30 = sshll.u32 %s841_s4, 4  ;;  %s529_s30 = int_to_ptr.vmem [resolvable:$true] %s528_s30 }
  0x5e   :  { %589 = vmatpush3.bf16.msra.mxu0 %v666_v0  ;;  %v106_v4 = vpack.c.bf16 %v91_v3, %v90_v2  ;;  %v93_v6 = vld [vmem:[#allocation2 + $0x18] sm:$0xff]  ;;  %v94_v7 = vld [vmem:[#allocation2 + $0x20] sm:$0xff]  ;;  %v95_v8 = vld [vmem:[#allocation2 + $0x28] sm:$0xff]  ;;  %s802_s6 = scalar_lea.vmem %s529_s30, 2048  ;;  %p807_p13 = scmp.lt.s32.totalorder %s529_s30, %s529_s30 }
  0x5f   :  { %590 = vmatprep.subr.bf16.mxu0 %v667_v1  ;;  %v107_v9 = vpack.c.bf16 %v93_v6, %v92_v5  ;;  %v108_v10 = vpack.c.bf16 %v95_v8, %v94_v7  ;;  %v96_v11 = vld [vmem:[#allocation2 + $0x30] sm:$0xff]  ;;  %v97_v12 = vld [vmem:[#allocation2 + $0x38] sm:$0xff]  ;;  %v98_v13 = vld [vmem:[#allocation2 + $0x40] sm:$0xff]  ;;  %p803_p12 = scmp.ne.s32.totalorder %s529_s30, %s802_s6  ;;  %p808_p0 = scmp.lt.s32.totalorder %s802_s6, %s802_s6 }
  0x60   :  { %592 = vmatprep.mubr.msk.bf16.mxu0 %vm137_vm0, %v106_v4  ;;  %v99_v14 = vld [vmem:[#allocation2 + $0x48] sm:$0xff]  ;;  %v109_v15 = vpack.c.bf16 %v97_v12, %v96_v11  ;;  %v100_v17 = vld [vmem:[#allocation2 + $0x50] sm:$0xff]  ;;  %v101_v18 = vld [vmem:[#allocation2 + $0x58] sm:$0xff] }
  0x61   :  { %v110_v16 = vpack.c.bf16 %v99_v14, %v98_v13  ;;  %v102_v19 = vld [vmem:[#allocation2 + $0x60] sm:$0xff]  ;;  %v103_v20 = vld [vmem:[#allocation2 + $0x68] sm:$0xff]  ;;  %v111_v21 = vpack.c.bf16 %v101_v18, %v100_v17  ;;  %v104_v23 = vld [vmem:[#allocation2 + $0x70] sm:$0xff]  ;;  %p809_p1 = por %p808_p0, %p807_p13 }
  0x62   :  { %591 = vmatpush3.bf16.msra.mxu0 %v667_v1  ;;  %v112_v22 = vpack.c.bf16 %v103_v20, %v102_v19  ;;  %v105_v24 = vld [vmem:[#allocation2 + $0x78] sm:$0xff]  ;;  %v670_v28 = vld [vmem:[#allocation8 + $0x10] sm:$0xff]   ;;  %v671_v29 = vld [vmem:[#allocation8 + $0x18] sm:$0xff]  }
  0x63   :  { %v113_v25 = vpack.c.bf16 %v105_v24, %v104_v23  ;;  %v668_v26 = vld [vmem:[#allocation8] sm:$0xff]   ;;  %v669_v27 = vld [vmem:[#allocation8 + $0x8] sm:$0xff]   ;;  %v674_v32 = vld [vmem:[#allocation8 + $0x30] sm:$0xff]   ;;  %p810_p2 = pnand %p809_p1, %p803_p12 }
  0x64   :  { %608 = vmatprep.subr.bf16.mxu0 %v668_v26  ;;  %640 = vmatprep.subr.bf16.mxu1 %v668_v26  ;;  %v672_v30 = vld [vmem:[#allocation8 + $0x20] sm:$0xff]   ;;  %v673_v31 = vld [vmem:[#allocation8 + $0x28] sm:$0xff]   ;;  %v675_v33 = vld [vmem:[#allocation8 + $0x38] sm:$0xff]  }
  0x65   :  { %593 = vmatmul.mubr.msk.bf16.vlgmr.msra.gmra.mrb[0].mxu0 %vm137_vm0, %v107_v9  ;;  %648 = vmatpush3.bf16.msra.mxu1 %v668_v26  ;;  %v943_v35 = vld [vmem:[#allocation7] ss:$0 sm:$0xff] }
  0x66   :  { %596 = vmatprep.mubr.msk.bf16.mxu0 %vm137_vm0, %v108_v10  ;;  %609 = vmatpush3.bf16.msra.mxu0 %v668_v26 }
  0x67   :  { %610 = vmatprep.subr.bf16.mxu0 %v669_v27  ;;  %641 = vmatprep.subr.bf16.mxu1 %v669_v27 }
  0x69   :  { %649 = vmatpush3.bf16.msra.mxu1 %v669_v27 }
  0x6a   :  { %611 = vmatpush3.bf16.msra.mxu0 %v669_v27  ;;  %642 = vmatprep.subr.bf16.mxu1 %v670_v28 }
  0x6b   :  { %612 = vmatprep.subr.bf16.mxu0 %v670_v28 }
  0x6d   :  { %597 = vmatmul.mubr.msk.bf16.gmra.mrb[4].mxu0 %vm137_vm0, %v109_v15  ;;  %650 = vmatpush3.bf16.msra.mxu1 %v670_v28 }
  0x6e   :  { %600 = vmatprep.mubr.msk.bf16.mxu0 %vm137_vm0, %v110_v16  ;;  %613 = vmatpush3.bf16.msra.mxu0 %v670_v28 }
  0x6f   :  { %614 = vmatprep.subr.bf16.mxu0 %v671_v29  ;;  %643 = vmatprep.subr.bf16.mxu1 %v671_v29 }
  0x71   :  { %651 = vmatpush3.bf16.msra.mxu1 %v671_v29 }
  0x72   :  { %615 = vmatpush3.bf16.msra.mxu0 %v671_v29  ;;  %644 = vmatprep.subr.bf16.mxu1 %v672_v30 }
  0x73   :  { %616 = vmatprep.subr.bf16.mxu0 %v672_v30 }
  0x75   :  { %601 = vmatmul.mubr.msk.bf16.gmra.mrb[8].mxu0 %vm137_vm0, %v111_v21  ;;  %652 = vmatpush3.bf16.msra.mxu1 %v672_v30 }
  0x76   :  { %604 = vmatprep.mubr.msk.bf16.mxu0 %vm137_vm0, %v112_v22  ;;  %617 = vmatpush3.bf16.msra.mxu0 %v672_v30 }
  0x77   :  { %618 = vmatprep.subr.bf16.mxu0 %v673_v31  ;;  %645 = vmatprep.subr.bf16.mxu1 %v673_v31 }
  0x79   :  { %653 = vmatpush3.bf16.msra.mxu1 %v673_v31 }
  0x7a   :  { %619 = vmatpush3.bf16.msra.mxu0 %v673_v31  ;;  %646 = vmatprep.subr.bf16.mxu1 %v674_v32 }
  0x7b   :  { %620 = vmatprep.subr.bf16.mxu0 %v674_v32 }
  0x7d   :  { %605 = vmatmul.mubr.msk.bf16.gmra.mrb[12].mxu0 %vm137_vm0, %v113_v25  ;;  %654 = vmatpush3.bf16.msra.mxu1 %v674_v32 }
  0x7e   :  { %621 = vmatpush3.bf16.msra.mxu0 %v674_v32  ;;  %647 = vmatprep.subr.bf16.mxu1 %v675_v33 }
  0x7f   :  { %622 = vmatprep.subr.bf16.mxu0 %v675_v33 }
  0x81   :  { %655 = vmatpush3.bf16.msra.mxu1 %v675_v33 }
  0x82   :  { %623 = vmatpush3.bf16.msra.mxu0 %v675_v33 }
 0x138   :  { %v594_v34 = vpop.f32.mrb[0].mxu0 }
 0x139   :  { %v196_v36 = vpop.f32.mrb[1].mxu0  ;;  %v205_v38 = vadd.f32 %v594_v34, %v943_v35 }
 0x13a   :  { %v595_v37 = vpop.f32.mrb[2].mxu0  ;;  %v197_v41 = vadd.f32 %v943_v35, %v196_v36 }
 0x13b   :  { %v208_v39 = vadd.f32 %v595_v37, %v943_v35  ;;  %v199_v40 = vpop.f32.mrb[3].mxu0 }
 0x13c   :  { %v200_v42 = vadd.f32 %v943_v35, %v199_v40 }
 0x13d   :  { %v949_v43 = vpack.c.bf16 %v208_v39, %v205_v38 }
 0x13e   :  { %v951_v44 = vpack.c.bf16 %v200_v42, %v197_v41 }
 0x13f   :  { %v276_v45 = vmul.bf16 1027030327, %v949_v43 }
 0x140   :  { %v275_v46 = vmul.bf16 1027030327, %v951_v44  ;;  %v598_v47 = vpop.f32.mrb[4].mxu0  ;;  %v267_v42 = vmul.bf16 1056980736, %v951_v44 }
 0x141   :  { %v284_v48 = vmul.bf16 %v276_v45, %v949_v43  ;;  %v212_v49 = vpop.f32.mrb[5].mxu0  ;;  %v221_v53 = vadd.f32 %v598_v47, %v943_v35 }
 0x142   :  { %v599_v50 = vpop.f32.mrb[6].mxu0  ;;  %v283_v51 = vmul.bf16 %v275_v46, %v951_v44  ;;  %v213_v56 = vadd.f32 %v943_v35, %v212_v49 }
 0x143   :  { %v292_v52 = vmul.bf16 %v284_v48, %v949_v43  ;;  %v224_v54 = vadd.f32 %v599_v50, %v943_v35  ;;  %v215_v55 = vpop.f32.mrb[7].mxu0  ;;  %v268_v48 = vmul.bf16 1056980736, %v949_v43 }
 0x144   :  { %v216_v57 = vadd.f32 %v943_v35, %v215_v55  ;;  %v291_v58 = vmul.bf16 %v283_v51, %v951_v44 }
 0x145   :  { %v300_v59 = vadd.bf16 %v292_v52, %v949_v43  ;;  %v964_v60 = vpack.c.bf16 %v224_v54, %v221_v53 }
 0x146   :  { %v966_v61 = vpack.c.bf16 %v216_v57, %v213_v56  ;;  %v299_v62 = vadd.bf16 %v291_v58, %v951_v44 }
 0x147   :  { %v308_v63 = vmul.bf16 1061961548, %v300_v59  ;;  %v278_v0 = vmul.bf16 1027030327, %v964_v60 }
 0x148   :  { %v602_v1 = vpop.f32.mrb[8].mxu0  ;;  %v307_v2 = vmul.bf16 1061961548, %v299_v62  ;;  %v277_v4 = vmul.bf16 1027030327, %v966_v61 }
 0x149   :  { %676 = vtanh.bf16 %v308_v63  ;;  %v228_v3 = vpop.f32.mrb[9].mxu0  ;;  %v286_v5 = vmul.bf16 %v278_v0, %v964_v60  ;;  %v237_v7 = vadd.f32 %v602_v1, %v943_v35  ;;  %v269_v43 = vmul.bf16 1056980736, %v966_v61 }
 0x14a   :  { %v603_v6 = vpop.f32.mrb[10].mxu0  ;;  %678 = vtanh.bf16 %v307_v2  ;;  %v285_v10 = vmul.bf16 %v277_v4, %v966_v61  ;;  %v229_v12 = vadd.f32 %v943_v35, %v228_v3  ;;  %v270_v1 = vmul.bf16 1056980736, %v964_v60 }
 0x14b   :  { %v240_v8 = vadd.f32 %v603_v6, %v943_v35  ;;  %v231_v9 = vpop.f32.mrb[11].mxu0  ;;  %v294_v11 = vmul.bf16 %v286_v5, %v964_v60 }
 0x14c   :  { %v232_v13 = vadd.f32 %v943_v35, %v231_v9  ;;  %v293_v15 = vmul.bf16 %v285_v10, %v966_v61 }
 0x14d   :  { %v978_v14 = vpack.c.bf16 %v240_v8, %v237_v7  ;;  %v302_v16 = vadd.bf16 %v294_v11, %v964_v60 }
 0x14e   :  { %v982_v17 = vpack.c.bf16 %v232_v13, %v229_v12  ;;  %v301_v19 = vadd.bf16 %v293_v15, %v966_v61 }
 0x14f   :  { %v280_v18 = vmul.bf16 1027030327, %v978_v14  ;;  %v310_v20 = vmul.bf16 1061961548, %v302_v16  ;;  %v272_v61 = vmul.bf16 1056980736, %v978_v14 }
 0x150   :  { %v279_v21 = vmul.bf16 1027030327, %v982_v17  ;;  %v606_v22 = vpop.f32.mrb[12].mxu0  ;;  %v309_v24 = vmul.bf16 1061961548, %v301_v19 }
 0x151   :  { %v244_v23 = vpop.f32.mrb[13].mxu0  ;;  %680 = vtanh.bf16 %v310_v20  ;;  %v288_v25 = vmul.bf16 %v280_v18, %v978_v14  ;;  %v253_v28 = vadd.f32 %v606_v22, %v943_v35  ;;  %v271_v7 = vmul.bf16 1056980736, %v982_v17 }
 0x152   :  { %v607_v26 = vpop.f32.mrb[14].mxu0  ;;  %v287_v27 = vmul.bf16 %v279_v21, %v982_v17  ;;  %682 = vtanh.bf16 %v309_v24  ;;  %v245_v33 = vadd.f32 %v943_v35, %v244_v23  ;;  %v553_v21 = vld [vmem:[#allocation10] ss:$0 sm:$0xff] }
 0x153   :  { %v256_v29 = vadd.f32 %v607_v26, %v943_v35  ;;  %v247_v30 = vpop.f32.mrb[15].mxu0  ;;  %v296_v31 = vmul.bf16 %v288_v25, %v978_v14 }
 0x154   :  { %v677_v32 = vpop.eup %676  ;;  %v248_v34 = vadd.f32 %v943_v35, %v247_v30  ;;  %v295_v36 = vmul.bf16 %v287_v27, %v982_v17 }
 0x155   :  { %v679_v37 = vpop.eup %678  ;;  %v266_v38 = vpack.c.bf16 %v256_v29, %v253_v28  ;;  %v324_v39 = vadd.bf16 1065369472, %v677_v32  ;;  %v304_v40 = vadd.bf16 %v296_v31, %v978_v14 }
 0x156   :  { %v265_v41 = vpack.c.bf16 %v248_v34, %v245_v33  ;;  %v323_v45 = vadd.bf16 1065369472, %v679_v37  ;;  %v303_v46 = vadd.bf16 %v295_v36, %v982_v17 }
 0x157   :  { %v282_v47 = vmul.bf16 1027030327, %v266_v38  ;;  %v312_v49 = vmul.bf16 1061961548, %v304_v40  ;;  %v332_v52 = vmul.bf16 %v324_v39, %v268_v48  ;;  %v274_v19 = vmul.bf16 1056980736, %v266_v38 }
 0x158   :  { %v281_v50 = vmul.bf16 1027030327, %v265_v41  ;;  %v331_v51 = vmul.bf16 %v323_v45, %v267_v42  ;;  %v311_v35 = vmul.bf16 1061961548, %v303_v46  ;;  %v273_v13 = vmul.bf16 1056980736, %v265_v41 }
 0x159   :  { %684 = vtanh.bf16 %v312_v49  ;;  %v290_v53 = vmul.bf16 %v282_v47, %v266_v38 }
 0x15a   :  { %624 = vmatprep.mubr.bf16.mxu0 %v331_v51  ;;  %686 = vtanh.bf16 %v311_v35  ;;  %v289_v54 = vmul.bf16 %v281_v50, %v265_v41 }
 0x15b   :  { %625 = vmatmul.mubr.bf16.vlgmr.msra.gmra.mrb[16].mxu0 %v332_v52  ;;  %v298_v55 = vmul.bf16 %v290_v53, %v266_v38 }
 0x15c   :  { %v681_v56 = vpop.eup %680  ;;  %v297_v44 = vmul.bf16 %v289_v54, %v265_v41 }
 0x15d   :  { %v306_v57 = vadd.bf16 %v298_v55, %v266_v38  ;;  %v683_v58 = vpop.eup %682  ;;  %v326_v59 = vadd.bf16 1065369472, %v681_v56 }
 0x15e   :  { %v305_v62 = vadd.bf16 %v297_v44, %v265_v41  ;;  %v325_v63 = vadd.bf16 1065369472, %v683_v58 }
 0x15f   :  { %v314_v0 = vmul.bf16 1061961548, %v306_v57  ;;  %v334_v4 = vmul.bf16 %v326_v59, %v270_v1 }
 0x160   :  { %v313_v2 = vmul.bf16 1061961548, %v305_v62  ;;  %v333_v3 = vmul.bf16 %v325_v63, %v269_v43 }
 0x161   :  { %688 = vtanh.bf16 %v314_v0 }
 0x162   :  { %690 = vtanh.bf16 %v313_v2  ;;  %628 = vmatprep.mubr.bf16.mxu1 %v333_v3 }
 0x163   :  { %629 = vmatmul.mubr.bf16.vlgmr.msra.gmra.mrb[0].mxu1 %v334_v4 }
 0x164   :  { %v685_v5 = vpop.eup %684 }
 0x165   :  { %v687_v6 = vpop.eup %686  ;;  %v328_v9 = vadd.bf16 1065369472, %v685_v5 }
 0x166   :  { %v327_v8 = vadd.bf16 1065369472, %v687_v6 }
 0x167   :  { %v336_v11 = vmul.bf16 %v328_v9, %v272_v61 }
 0x168   :  { %v335_v10 = vmul.bf16 %v327_v8, %v271_v7 }
 0x16a   :  { %632 = vmatprep.mubr.bf16.mxu1 %v335_v10 }
 0x16b   :  { %633 = vmatmul.mubr.bf16.gmra.mrb[4].mxu1 %v336_v11 }
 0x16c   :  { %v689_v12 = vpop.eup %688 }
 0x16d   :  { %v691_v60 = vpop.eup %690  ;;  %v330_v16 = vadd.bf16 1065369472, %v689_v12 }
 0x16e   :  { %v329_v15 = vadd.bf16 1065369472, %v691_v60 }
 0x16f   :  { %v338_v20 = vmul.bf16 %v330_v16, %v274_v19 }
 0x170   :  { %v337_v18 = vmul.bf16 %v329_v15, %v273_v13 }
 0x172   :  { %636 = vmatprep.mubr.bf16.mxu1 %v337_v18 }
 0x173   :  { %637 = vmatmul.mubr.bf16.gmra.mrb[8].mxu1 %v338_v20 }
 0x22e   :  { %v626_v17 = vpop.f32.mrb[16].mxu0 }
 0x22f   :  { %v453_v22 = vadd.f32 %v626_v17, %v553_v21  ;;  %v444_v23 = vpop.f32.mrb[17].mxu0 }
 0x230   :  { %v445_v24 = vadd.f32 %v553_v21, %v444_v23  ;;  %v627_v25 = vpop.f32.mrb[18].mxu0 }
 0x231   :  { %509 = vst [vmem:[#allocation11 + $0x10] sm:$0xff] %v453_v22  ;;  %v456_v14 = vadd.f32 %v627_v25, %v553_v21  ;;  %v447_v26 = vpop.f32.mrb[19].mxu0 }
 0x232   :  { %507 = vst [vmem:[#allocation11] sm:$0xff] %v445_v24  ;;  %v448_v27 = vadd.f32 %v553_v21, %v447_v26 }
 0x233   :  { %510 = vst [vmem:[#allocation11 + $0x18] sm:$0xff] %v456_v14 }
 0x234   :  { %508 = vst [vmem:[#allocation11 + $0x8] sm:$0xff] %v448_v27 }
 0x236   :  { %v630_v28 = vpop.f32.mrb[0].mxu1 }
 0x237   :  { %v469_v29 = vadd.f32 %v630_v28, %v553_v21  ;;  %v460_v30 = vpop.f32.mrb[1].mxu1 }
 0x238   :  { %v461_v31 = vadd.f32 %v553_v21, %v460_v30  ;;  %v631_v32 = vpop.f32.mrb[2].mxu1 }
 0x239   :  { %513 = vst [vmem:[#allocation11 + $0x30] sm:$0xff] %v469_v29  ;;  %v472_v33 = vadd.f32 %v631_v32, %v553_v21  ;;  %v463_v34 = vpop.f32.mrb[3].mxu1 }
 0x23a   :  { %511 = vst [vmem:[#allocation11 + $0x20] sm:$0xff] %v461_v31  ;;  %v464_v36 = vadd.f32 %v553_v21, %v463_v34 }
 0x23b   :  { %514 = vst [vmem:[#allocation11 + $0x38] sm:$0xff] %v472_v33 }
 0x23c   :  { %512 = vst [vmem:[#allocation11 + $0x28] sm:$0xff] %v464_v36 }
 0x23e   :  { %v634_v37 = vpop.f32.mrb[4].mxu1 }
 0x23f   :  { %v485_v38 = vadd.f32 %v634_v37, %v553_v21  ;;  %v476_v39 = vpop.f32.mrb[5].mxu1 }
 0x240   :  { %v477_v40 = vadd.f32 %v553_v21, %v476_v39  ;;  %v635_v41 = vpop.f32.mrb[6].mxu1 }
 0x241   :  { %517 = vst [vmem:[#allocation11 + $0x50] sm:$0xff] %v485_v38  ;;  %v488_v42 = vadd.f32 %v635_v41, %v553_v21  ;;  %v479_v45 = vpop.f32.mrb[7].mxu1 }
 0x242   :  { %515 = vst [vmem:[#allocation11 + $0x40] sm:$0xff] %v477_v40  ;;  %v480_v46 = vadd.f32 %v553_v21, %v479_v45 }
 0x243   :  { %518 = vst [vmem:[#allocation11 + $0x58] sm:$0xff] %v488_v42 }
 0x244   :  { %516 = vst [vmem:[#allocation11 + $0x48] sm:$0xff] %v480_v46 }
 0x246   :  { %v638_v47 = vpop.f32.mrb[8].mxu1 }
 0x247   :  { %v501_v48 = vadd.f32 %v638_v47, %v553_v21  ;;  %v492_v49 = vpop.f32.mrb[9].mxu1 }
 0x248   :  { %v493_v50 = vadd.f32 %v553_v21, %v492_v49  ;;  %v639_v51 = vpop.f32.mrb[10].mxu1 }
 0x249   :  { %521 = vst [vmem:[#allocation11 + $0x70] sm:$0xff] %v501_v48  ;;  %v504_v35 = vadd.f32 %v639_v51, %v553_v21  ;;  %v495_v52 = vpop.f32.mrb[11].mxu1 }
 0x24a   :  { %519 = vst [vmem:[#allocation11 + $0x60] sm:$0xff] %v493_v50  ;;  %v496_v53 = vadd.f32 %v553_v21, %v495_v52 }
 0x24b   :  { %522 = vst [vmem:[#allocation11 + $0x78] sm:$0xff] %v504_v35 }
 0x24c   :  { %520 = vst [vmem:[#allocation11 + $0x68] sm:$0xff] %v496_v53 }
 0x24d   :  { %813 = shalt.err (!%p810_p2)
}
 0x24e   :  { %s814_s9 = scalar_lea.hbm %s1023_s5, 2048 }
 0x24f   :  { %p815_p3 = scmp.ne.s32.totalorder %s1023_s5, %s814_s9  ;;  %p818_p4 = scmp.lt.u32.totalorder %s814_s9, %s1023_s5 }
 0x251   :  { %p820_p5 = pnand %p818_p4, %p815_p3 }
 0x253   :  { %823 = shalt.err (!%p820_p5)
}
 0x254   :  { %534 = dma.vmem_to_hbm [thread:$0]  %s529_s30, 2048, %s1023_s5, [#allocation4], %s837_s3, %s837_s3, %s838_s28  }
 0x255   :  { %830 = dma.done.wait [#allocation4], 2048  }
 0x256   :  { %831 = vsyncadd [#allocation4], 4294965248 }
 0x257   :  { %538 = vsyncpa [#allocation3], 1 }
 0x258   :  { %539 = vsyncpa [#allocation6], 1 }
 0x259   :  { %540 = vsyncpa [#allocation9], 1 }
 0x25a   :  { %541 = vsyncpa [#allocation4], 1 }

</bundles_post_ra>
